<compile_context>
chip_gen: v7x
topology: tpu7x:2x2x1
jax: 0.10.0
libtpu: 0.0.40
codegen_flags: <defaults>
</compile_context>

<pallas_src>
import functools
import math

import jax
import jax.numpy as jnp
from jax.experimental import pallas as pl
from jax.experimental.pallas import tpu as pltpu


def linear_kernel(x_ref, w_ref, b_ref, o_ref):
    # x_ref: (C_in, tm)  native channel-first token tile (no wrapper transpose)
    # w_ref: (tn, C_in)  native torch nn.Linear weight layout tile
    # b_ref: (1, tn)
    # o_ref: (tm, tn)    token-major output tile (lane-dense in C_out)
    y = jnp.dot(w_ref[...], x_ref[...], preferred_element_type=jnp.float32)  # (tn, tm)
    o_ref[...] = (y.T + b_ref[...].astype(jnp.float32)).astype(o_ref.dtype)


def _pick_tile(dim, cap):
    """Largest (8,128)-friendly tile <= cap; full extent if dim is small."""
    if dim <= cap:
        return dim  # a block equal to the full dim is always legal
    for t in (cap, 512, 256, 128):
        if dim % t == 0:
            return t
    return 128  # ragged tail -> Pallas masks the edge block


@functools.partial(jax.jit, static_argnames=("tm_cap", "tn_cap"))
def linear_mlp_forward(x, weight, bias, *, tm_cap=512, tn_cap=1024):
    """x: (B, C_in, *spatial); weight: (C_out, C_in); bias: (C_out,)."""
    B, C_in = x.shape[0], x.shape[1]
    n_sp = math.prod(x.shape[2:])
    C_out = weight.shape[0]

    x3 = x.reshape(B, C_in, n_sp)        # flatten(2): free reshape, no copy of note
    b2 = bias.reshape(1, C_out)

    tm = _pick_tile(n_sp, tm_cap)        # token tile (rows of the output)
    tn = _pick_tile(C_out, tn_cap)       # output-channel tile (lane dim)
    grid = (pl.cdiv(C_out, tn), B, pl.cdiv(n_sp, tm))   # j (outer), b, i (inner)

    return pl.pallas_call(
        linear_kernel,
        out_shape=jax.ShapeDtypeStruct((B, n_sp, C_out), x.dtype),
        grid=grid,
        in_specs=[
            pl.BlockSpec((None, C_in, tm), lambda j, b, i: (b, 0, i)),  # x (B,C_in,N)
            pl.BlockSpec((tn, C_in), lambda j, b, i: (j, 0)),           # W (C_out,C_in)
            pl.BlockSpec((1, tn), lambda j, b, i: (0, j)),              # bias
        ],
        out_specs=pl.BlockSpec((None, tm, tn), lambda j, b, i: (b, i, j)),
        compiler_params=pltpu.CompilerParams(
            dimension_semantics=("parallel", "parallel", "parallel"),
            vmem_limit_bytes=32 << 20,
        ),
    )(x3, weight, b2)


def linear_mlp_reference(x, weight, bias):
    B, C_in = x.shape[0], x.shape[1]
    n_sp = math.prod(x.shape[2:])
    x2 = jnp.transpose(x.reshape(B, C_in, n_sp), (0, 2, 1))
    y = jnp.einsum(
        "bnk,ok->bno", x2, weight, precision=jax.lax.Precision.HIGHEST
    )
    return y + bias


if __name__ == "__main__":
    key = jax.random.PRNGKey(0)
    kx, kw, kb = jax.random.split(key, 3)

    # Small shapes consistent with the module: input_dim=256, embed_dim=128,
    # batch=2, spatial 8x8 (-> N = 64 tokens).
    B, C_in, H, W = 2, 256, 8, 8
    C_out = 128

    x = jax.random.normal(kx, (B, C_in, H, W), dtype=jnp.float32)
    weight = 0.02 * jax.random.normal(kw, (C_out, C_in), dtype=jnp.float32)
    bias = 0.01 * jax.random.normal(kb, (C_out,), dtype=jnp.float32)

    out = linear_mlp_forward(x, weight, bias)
    out = jax.block_until_ready(out)

    ref = linear_mlp_reference(x, weight, bias)
    assert out.shape == (B, H * W, C_out), out.shape
    assert jnp.allclose(out, ref, atol=5e-3, rtol=5e-3), "mismatch vs reference"

    print("KERNEL_OK")
</pallas_src>

<mosaic_0001>
module attributes {stable_mosaic.version = 11 : i64} {
  func.func @linear_kernel(%arg0: i32, %arg1: i32, %arg2: i32, %arg3: memref<1x256x64xf32, #tpu.memory_space<vmem>>, %arg4: memref<128x256xf32, #tpu.memory_space<vmem>>, %arg5: memref<1x128xf32, #tpu.memory_space<vmem>>, %arg6: memref<1x64x128xf32, #tpu.memory_space<vmem>>) attributes {dimension_semantics = [#tpu.dimension_semantics<parallel>, #tpu.dimension_semantics<parallel>, #tpu.dimension_semantics<parallel>], iteration_bounds = array<i64: 1, 2, 1>, scalar_prefetch = 0 : i64, scratch_operands = 0 : i64, tpu.core_type = #tpu.core_type<tc>, window_params = [{transform_indices = @transform_0, window_bounds = array<i64: 1, 256, 64>}, {transform_indices = @transform_1, window_bounds = array<i64: 128, 256>}, {transform_indices = @transform_2, window_bounds = array<i64: 1, 128>}, {transform_indices = @transform_3, window_bounds = array<i64: 1, 64, 128>}]} {
    %c0 = arith.constant 0 : index
    %c0_0 = arith.constant 0 : index
    %0 = vector.load %arg4[%c0, %c0_0] : memref<128x256xf32, #tpu.memory_space<vmem>>, vector<128x256xf32>
    %c0_1 = arith.constant 0 : index
    %c0_2 = arith.constant 0 : index
    %c0_3 = arith.constant 0 : index
    %1 = vector.load %arg3[%c0_1, %c0_2, %c0_3] : memref<1x256x64xf32, #tpu.memory_space<vmem>>, vector<1x256x64xf32>
    %2 = vector.shape_cast %1 : vector<1x256x64xf32> to vector<256x64xf32>
    %cst = arith.constant dense<0.000000e+00> : vector<128x64xf32>
    %3 = tpu.matmul %0, %2, %cst {dimension_numbers = #tpu.dot_dimension_numbers<[1], [0], [0], [1], [0, 0, 1, 1], [], []>} : vector<128x256xf32>, vector<256x64xf32>, vector<128x64xf32> -> vector<128x64xf32>
    %4 = tpu.transpose %3, [1, 0] : vector<128x64xf32> -> vector<64x128xf32>
    %c0_4 = arith.constant 0 : index
    %c0_5 = arith.constant 0 : index
    %5 = vector.load %arg5[%c0_4, %c0_5] : memref<1x128xf32, #tpu.memory_space<vmem>>, vector<1x128xf32>
    %6 = vector.broadcast %5 : vector<1x128xf32> to vector<64x128xf32>
    %7 = arith.addf %4, %6 : vector<64x128xf32>
    %c0_6 = arith.constant 0 : index
    %c0_7 = arith.constant 0 : index
    %c0_8 = arith.constant 0 : index
    %8 = vector.load %arg6[%c0_6, %c0_7, %c0_8] : memref<1x64x128xf32, #tpu.memory_space<vmem>>, vector<1x64x128xf32>
    %9 = vector.shape_cast %8 : vector<1x64x128xf32> to vector<64x128xf32>
    %10 = vector.shape_cast %7 : vector<64x128xf32> to vector<1x64x128xf32>
    tpu.vector_store %arg6[%c0_6, %c0_7, %c0_8], %10 {strides = array<i32>} : memref<1x64x128xf32, #tpu.memory_space<vmem>>, vector<1x64x128xf32>,
    return
  }
  func.func @transform_0(%arg0: i32, %arg1: i32, %arg2: i32) -> (i32, i32, i32) {
    %c0_i32 = arith.constant 0 : i32
    %c0_i32_0 = arith.constant 0 : i32
    return %arg1, %c0_i32, %arg2 : i32, i32, i32
  }
  func.func @transform_1(%arg0: i32, %arg1: i32, %arg2: i32) -> (i32, i32) {
    %c0_i32 = arith.constant 0 : i32
    %c0_i32_0 = arith.constant 0 : i32
    return %arg0, %c0_i32 : i32, i32
  }
  func.func @transform_2(%arg0: i32, %arg1: i32, %arg2: i32) -> (i32, i32) {
    %c0_i32 = arith.constant 0 : i32
    %c0_i32_0 = arith.constant 0 : i32
    return %c0_i32, %arg0 : i32, i32
  }
  func.func @transform_3(%arg0: i32, %arg1: i32, %arg2: i32) -> (i32, i32, i32) {
    %c0_i32 = arith.constant 0 : i32
    return %arg1, %arg2, %arg0 : i32, i32, i32
  }
}

</mosaic_0001>

<bundles_post_ra>
// kernel: linear_mlp_forward.1
= control target key start
LH: loop header
LB: loop body
LE: loop exit
PB: predicated region body
PF: predicated region fallthrough
CT: control target
= control target key end

     0   :  { %8 = vsyncpa [#allocation3], 0  ;;  %s1192_s0 = inlined_call_operand.vmem [shape: f32[2,256,64], index: 0, kind: input, shape index: {}]   ;;  %s1193_s1 = inlined_call_operand.vmem [shape: f32[128,256], index: 1, kind: input, shape index: {}]   ;;  %s1194_s2 = inlined_call_operand.vmem [shape: f32[1,128], index: 2, kind: input, shape index: {}]   ;;  %s1195_s3 = inlined_call_operand.hbm [shape: f32[2,64,128], index: 3, kind: output, shape index: {}]  }
   0x1   :  { %10 = vsyncpa [#allocation3 + $0x1], 0  ;;  %s940_s12 = smov 0   ;;  %s942_s13 = smov 0  }
   0x2   :  { %s944_s14 = smov 0   ;;  %s946_s15 = smov 0  }
   0x3   :  { %s948_s16 = smov 0   ;;  %s950_s17 = smov 0  }
   0x4 LB: > { %s634_s18 = sadd.s32 4294967295, %s915_s17   ;;  %s635_s19 = sadd.s32 4294967294, %s915_s17   ;;  %s915_s17 = sphi %s950_s17, %s16_s17   ;;  %s911_s16 = sphi %s948_s16, %s1202_s16   ;;  %s907_s15 = sphi %s946_s15, %s1201_s15   ;;  %s903_s14 = sphi %s944_s14, %s1200_s14   ;;  %s899_s13 = sphi %s942_s13, %s1199_s13   ;;  %s895_s12 = sphi %s940_s12, %s1198_s12  }
   0x5   : > { %s31_s20 = sadd.s32 1, %s911_s16  ;;  %s126_s21 = sadd.s32 1, %s903_s14 }
   0x6   : > { %p33_p0 = scmp.ge.s32.totalorder %s31_s20, 2  ;;  %p136_p1 = scmp.ne.s32.totalorder %s903_s14, %s899_s13 }
   0x7   : > { %p137_p2 = scmp.eq.s32.totalorder %s634_s18, 1  ;;  %p142_p3 = scmp.ne.s32.totalorder %s899_s13, %s895_s12 }
   0x8   : > { %s1204_s20 = smov (%p33_p0, %s31_s20), 0  ;;  %p143_p5 = scmp.eq.s32.totalorder %s635_s19, 1 }
   0x9   : > { %p980_p4 = por %p137_p2, %p136_p1  ;;  %s119_s23 = ssub.s32 %s911_s16, %s1204_s20 }
   0xa   : > { %p640_p6 = scmp.ge.s32.totalorder %s915_s17, 1  ;;  %p124_p7 = scmp.eq.s32.totalorder %s119_s23, 0 }
   0xb   : > { %p987_p8 = por %p143_p5, %p142_p3  ;;  %p188_p9 = scmp.lt.s32.totalorder %s915_s17, 3 }
   0xc   : > { %s993_s25 = scalar_select %p124_p7, %s903_s14, %s126_s21  }
   0xd   : > { %p189_p10 = pnand %p640_p6, %p188_p9 }
   0xe   : > { %p224_p11 = scmp.lt.s32.totalorder (!%p189_p10), %s907_s15, 1  ;;  %v244_v0 = vld [vmem:[%s1193_s1 + $0x8] sm:$0xff] (!%p189_p10)  ;;  %v243_v50 = vld [vmem:[%s1193_s1] sm:$0xff] (!%p189_p10)  ;;  %v246_v52 = vld [vmem:[%s1193_s1 + $0x18] sm:$0xff] (!%p189_p10)  ;;  %s221_s27 = sand.u32 (!%p189_p10), 1, %s899_s13  }
   0xf   : > { %192 = sbr.rel (%p189_p10) target bundleno = 450 (0x1c2), region = 32  ;;  %371 = vmatprep.mubr.f32.mxu0 (!%p189_p10), %v244_v0  ;;  %v260_v1 = vld [vmem:[%s1193_s1 + $0x88] sm:$0xff] (!%p189_p10)  ;;  %v259_v51 = vld [vmem:[%s1193_s1 + $0x80] sm:$0xff] (!%p189_p10)  ;;  %v262_v53 = vld [vmem:[%s1193_s1 + $0x98] sm:$0xff] (!%p189_p10)  ;;  %s1146_s10 = scalar_lea.sflag (!%p189_p10), [#allocation3], %s221_s27 }
  0x10   : > { %411 = vmatprep.mubr.f32.mxu1 (!%p189_p10), %v260_v1  ;;  %v245_v54 = vld [vmem:[%s1193_s1 + $0x10] sm:$0xff] (!%p189_p10)  ;;  %v248_v56 = vld [vmem:[%s1193_s1 + $0x28] sm:$0xff] (!%p189_p10)  ;;  %v247_v58 = vld [vmem:[%s1193_s1 + $0x20] sm:$0xff] (!%p189_p10) }
  0x11   : > { %v261_v55 = vld [vmem:[%s1193_s1 + $0x90] sm:$0xff] (!%p189_p10)  ;;  %v264_v57 = vld [vmem:[%s1193_s1 + $0xa8] sm:$0xff] (!%p189_p10)  ;;  %v263_v59 = vld [vmem:[%s1193_s1 + $0xa0] sm:$0xff] (!%p189_p10) }
  0x12   : > { %v250_v60 = vld [vmem:[%s1193_s1 + $0x38] sm:$0xff] (!%p189_p10)  ;;  %v249_v62 = vld [vmem:[%s1193_s1 + $0x30] sm:$0xff] (!%p189_p10)  ;;  %v252_v0 = vld [vmem:[%s1193_s1 + $0x48] sm:$0xff] (!%p189_p10) }
  0x13   : > { %v266_v61 = vld [vmem:[%s1193_s1 + $0xb8] sm:$0xff] (!%p189_p10)  ;;  %v265_v63 = vld [vmem:[%s1193_s1 + $0xb0] sm:$0xff] (!%p189_p10)  ;;  %v268_v1 = vld [vmem:[%s1193_s1 + $0xc8] sm:$0xff] (!%p189_p10) }
  0x16   : > { %s225_s28 = scalar_select %p224_p11, %s907_s15, 1 }
  0x18   : > { %s650_s29 = sshll.u32 %s225_s28, 8  ;;  %s641_s28 = sshll.u32 %s221_s27, 6 }
  0x19   : > { %s1003_s5 = scalar_lea.vmem %s1192_s0, %s650_s29  ;;  %s223_s4 = scalar_lea.vmem [#allocation2], %s641_s28 }
  0x1a   : > { %v291_v2 = vld [vmem:[%s1003_s5 + $0x80] sm:$0xff]  ;;  %v292_v3 = vld [vmem:[%s1003_s5 + $0x88] sm:$0xff]  ;;  %v293_v7 = vld [vmem:[%s1003_s5 + $0x90] sm:$0xff]  ;;  %s524_s6 = sshll.u32 %s223_s4, 4  ;;  %s1142_s6 = int_to_ptr.vmem [resolvable:$true] %s524_s6 }
  0x1b   : > { %v275_v4 = vld [vmem:[%s1003_s5] sm:$0xff]  ;;  %v732_v5 = vpack.c.bf16 %v292_v3, %v291_v2  ;;  %v276_v6 = vld [vmem:[%s1003_s5 + $0x8] sm:$0xff]  ;;  %v294_v8 = vld [vmem:[%s1003_s5 + $0x98] sm:$0xff]  ;;  %s837_s11 = scalar_lea.vmem %s1142_s6, 1024 }
  0x1c   : > { %v734_v9 = vpack.c.bf16 %v276_v6, %v275_v4  ;;  %v736_v10 = vpack.c.bf16 %v294_v8, %v293_v7  ;;  %v277_v11 = vld [vmem:[%s1003_s5 + $0x10] sm:$0xff]  ;;  %v278_v12 = vld [vmem:[%s1003_s5 + $0x18] sm:$0xff]  ;;  %v295_v13 = vld [vmem:[%s1003_s5 + $0xa0] sm:$0xff]  ;;  %p838_p12 = scmp.ne.s32.totalorder %s1142_s6, %s837_s11 }
  0x1d   : > { %733 = vmatprep.subr.bf16.mxu0 %v732_v5  ;;  %v296_v14 = vld [vmem:[%s1003_s5 + $0xa8] sm:$0xff]  ;;  %764 = vmatprep.subr.bf16.mxu1 %v732_v5  ;;  %v738_v15 = vpack.c.bf16 %v278_v12, %v277_v11  ;;  %v279_v17 = vld [vmem:[%s1003_s5 + $0x20] sm:$0xff]  ;;  %v297_v19 = vld [vmem:[%s1003_s5 + $0xb0] sm:$0xff] }
  0x1e   : > { %735 = vmatpush3.bf16.msra.mxu0 %v734_v9  ;;  %772 = vmatpush3.bf16.msra.mxu1 %v734_v9  ;;  %v740_v16 = vpack.c.bf16 %v296_v14, %v295_v13  ;;  %v280_v18 = vld [vmem:[%s1003_s5 + $0x28] sm:$0xff]  ;;  %v298_v20 = vld [vmem:[%s1003_s5 + $0xb8] sm:$0xff]  ;;  %v281_v23 = vld [vmem:[%s1003_s5 + $0x30] sm:$0xff]  ;;  %p839_p13 = pnand %p838_p12, %p980_p4 }
  0x1f   : > { %737 = vmatprep.subr.bf16.mxu0 %v736_v10  ;;  %765 = vmatprep.subr.bf16.mxu1 %v736_v10  ;;  %v742_v21 = vpack.c.bf16 %v280_v18, %v279_v17  ;;  %v744_v22 = vpack.c.bf16 %v298_v20, %v297_v19  ;;  %v282_v24 = vld [vmem:[%s1003_s5 + $0x38] sm:$0xff]  ;;  %v299_v25 = vld [vmem:[%s1003_s5 + $0xc0] sm:$0xff]  ;;  %v300_v26 = vld [vmem:[%s1003_s5 + $0xc8] sm:$0xff] }
  0x20   : > { %v746_v27 = vpack.c.bf16 %v282_v24, %v281_v23  ;;  %v748_v28 = vpack.c.bf16 %v300_v26, %v299_v25  ;;  %v283_v29 = vld [vmem:[%s1003_s5 + $0x40] sm:$0xff]  ;;  %v284_v30 = vld [vmem:[%s1003_s5 + $0x48] sm:$0xff]  ;;  %v301_v31 = vld [vmem:[%s1003_s5 + $0xd0] sm:$0xff]  ;;  %p840_p0 = pneg %p839_p13 }
  0x21   : > { %v302_v32 = vld [vmem:[%s1003_s5 + $0xd8] sm:$0xff]  ;;  %v750_v33 = vpack.c.bf16 %v284_v30, %v283_v29  ;;  %v285_v35 = vld [vmem:[%s1003_s5 + $0x50] sm:$0xff]  ;;  %v303_v37 = vld [vmem:[%s1003_s5 + $0xe0] sm:$0xff] }
  0x22   : > { %739 = vmatpush3.bf16.msra.mxu0 %v738_v15  ;;  %773 = vmatpush3.bf16.msra.mxu1 %v738_v15  ;;  %v752_v34 = vpack.c.bf16 %v302_v32, %v301_v31  ;;  %v286_v36 = vld [vmem:[%s1003_s5 + $0x58] sm:$0xff]  ;;  %v304_v38 = vld [vmem:[%s1003_s5 + $0xe8] sm:$0xff]  ;;  %v287_v41 = vld [vmem:[%s1003_s5 + $0x60] sm:$0xff] }
  0x23   : > { %741 = vmatprep.subr.bf16.mxu0 %v740_v16  ;;  %766 = vmatprep.subr.bf16.mxu1 %v740_v16  ;;  %v754_v39 = vpack.c.bf16 %v286_v36, %v285_v35  ;;  %v756_v40 = vpack.c.bf16 %v304_v38, %v303_v37  ;;  %v288_v42 = vld [vmem:[%s1003_s5 + $0x68] sm:$0xff]  ;;  %v305_v43 = vld [vmem:[%s1003_s5 + $0xf0] sm:$0xff]  ;;  %v306_v44 = vld [vmem:[%s1003_s5 + $0xf8] sm:$0xff] }
  0x24   : > { %v758_v45 = vpack.c.bf16 %v288_v42, %v287_v41  ;;  %v760_v46 = vpack.c.bf16 %v306_v44, %v305_v43  ;;  %v289_v47 = vld [vmem:[%s1003_s5 + $0x70] sm:$0xff]  ;;  %v290_v48 = vld [vmem:[%s1003_s5 + $0x78] sm:$0xff]  ;;  %v251_v2 = vld [vmem:[%s1193_s1 + $0x40] sm:$0xff]  ;;  %s651_s5 = sshll.u32 %s907_s15, 10  ;;  %s917_s15 = smov [#allocation2]  }
  0x25   : > { %v762_v49 = vpack.c.bf16 %v290_v48, %v289_v47  ;;  %v267_v3 = vld [vmem:[%s1193_s1 + $0xc0] sm:$0xff]  ;;  %v254_v4 = vld [vmem:[%s1193_s1 + $0x58] sm:$0xff]  ;;  %v253_v6 = vld [vmem:[%s1193_s1 + $0x50] sm:$0xff]  ;;  %s1140_s9 = scalar_lea.hbm %s1195_s3, %s651_s5  ;;  %s841_s18 = sshll.u32 %s917_s15, 4  ;;  %s842_s18 = int_to_ptr.vmem [resolvable:$false] %s841_s18 }
  0x26   : > { %743 = vmatpush3.bf16.msra.mxu0 %v742_v21  ;;  %774 = vmatpush3.bf16.msra.mxu1 %v742_v21  ;;  %v270_v5 = vld [vmem:[%s1193_s1 + $0xd8] sm:$0xff]  ;;  %v269_v7 = vld [vmem:[%s1193_s1 + $0xd0] sm:$0xff]  ;;  %v256_v8 = vld [vmem:[%s1193_s1 + $0x68] sm:$0xff]  ;;  %s843_s19 = scalar_lea.vmem %s842_s18, 2048  ;;  %p844_p1 = scmp.lt.s32.totalorder %s1142_s6, %s842_s18 }
  0x27   : > { %745 = vmatprep.subr.bf16.mxu0 %v744_v22  ;;  %767 = vmatprep.subr.bf16.mxu1 %v744_v22  ;;  %v272_v9 = vld [vmem:[%s1193_s1 + $0xe8] sm:$0xff]  ;;  %v255_v10 = vld [vmem:[%s1193_s1 + $0x60] sm:$0xff]  ;;  %v258_v12 = vld [vmem:[%s1193_s1 + $0x78] sm:$0xff]  ;;  %p845_p2 = scmp.lt.s32.totalorder %s843_s19, %s837_s11 }
  0x28   : > { %v271_v11 = vld [vmem:[%s1193_s1 + $0xe0] sm:$0xff]  ;;  %v274_v13 = vld [vmem:[%s1193_s1 + $0xf8] sm:$0xff]  ;;  %v257_v14 = vld [vmem:[%s1193_s1 + $0x70] sm:$0xff] }
  0x29   : > { %v273_v15 = vld [vmem:[%s1193_s1 + $0xf0] sm:$0xff]  ;;  %p846_p3 = por %p845_p2, %p844_p1 }
  0x2a   : > { %747 = vmatpush3.bf16.msra.mxu0 %v746_v27  ;;  %775 = vmatpush3.bf16.msra.mxu1 %v746_v27 }
  0x2b   : > { %749 = vmatprep.subr.bf16.mxu0 %v748_v28  ;;  %768 = vmatprep.subr.bf16.mxu1 %v748_v28  ;;  %p847_p5 = pnand %p846_p3, %p840_p0 }
  0x2e   : > { %751 = vmatpush3.bf16.msra.mxu0 %v750_v33  ;;  %776 = vmatpush3.bf16.msra.mxu1 %v750_v33 }
  0x2f   : > { %753 = vmatprep.subr.bf16.mxu0 %v752_v34  ;;  %769 = vmatprep.subr.bf16.mxu1 %v752_v34 }
  0x32   : > { %755 = vmatpush3.bf16.msra.mxu0 %v754_v39  ;;  %777 = vmatpush3.bf16.msra.mxu1 %v754_v39 }
  0x33   : > { %757 = vmatprep.subr.bf16.mxu0 %v756_v40  ;;  %770 = vmatprep.subr.bf16.mxu1 %v756_v40 }
  0x36   : > { %759 = vmatpush3.bf16.msra.mxu0 %v758_v45  ;;  %778 = vmatpush3.bf16.msra.mxu1 %v758_v45 }
  0x37   : > { %761 = vmatprep.subr.bf16.mxu0 %v760_v46  ;;  %771 = vmatprep.subr.bf16.mxu1 %v760_v46 }
  0x3a   : > { %763 = vmatpush3.bf16.msra.mxu0 %v762_v49  ;;  %779 = vmatpush3.bf16.msra.mxu1 %v762_v49 }
  0x3d   : > { %372 = vmatmul.mubr.f32.vlgmr.msra.gmra.mrb[0].mxu0 %v243_v50  ;;  %412 = vmatmul.mubr.f32.vlgmr.msra.gmra.mrb[0].mxu1 %v259_v51 }
  0x3e   : > { %376 = vmatprep.mubr.f32.mxu0 %v246_v52  ;;  %416 = vmatprep.mubr.f32.mxu1 %v262_v53 }
  0x41   : > { %377 = vmatmul.mubr.f32.gmra.mrb[2].mxu0 %v245_v54  ;;  %417 = vmatmul.mubr.f32.gmra.mrb[2].mxu1 %v261_v55 }
  0x42   : > { %381 = vmatprep.mubr.f32.mxu0 %v248_v56  ;;  %421 = vmatprep.mubr.f32.mxu1 %v264_v57 }
  0x45   : > { %382 = vmatmul.mubr.f32.gmra.mrb[4].mxu0 %v247_v58  ;;  %422 = vmatmul.mubr.f32.gmra.mrb[4].mxu1 %v263_v59 }
  0x46   : > { %386 = vmatprep.mubr.f32.mxu0 %v250_v60  ;;  %426 = vmatprep.mubr.f32.mxu1 %v266_v61 }
  0x49   : > { %387 = vmatmul.mubr.f32.gmra.mrb[6].mxu0 %v249_v62  ;;  %427 = vmatmul.mubr.f32.gmra.mrb[6].mxu1 %v265_v63 }
  0x4a   : > { %391 = vmatprep.mubr.f32.mxu0 %v252_v0  ;;  %431 = vmatprep.mubr.f32.mxu1 %v268_v1  ;;  %v644_v0 = vld [vmem:[%s1194_s2] ss:$0 sm:$0xff] }
  0x4d   : > { %392 = vmatmul.mubr.f32.gmra.mrb[8].mxu0 %v251_v2  ;;  %432 = vmatmul.mubr.f32.gmra.mrb[8].mxu1 %v267_v3 }
  0x4e   : > { %396 = vmatprep.mubr.f32.mxu0 %v254_v4  ;;  %436 = vmatprep.mubr.f32.mxu1 %v270_v5 }
  0x51   : > { %397 = vmatmul.mubr.f32.gmra.mrb[10].mxu0 %v253_v6  ;;  %437 = vmatmul.mubr.f32.gmra.mrb[10].mxu1 %v269_v7 }
  0x52   : > { %401 = vmatprep.mubr.f32.mxu0 %v256_v8  ;;  %441 = vmatprep.mubr.f32.mxu1 %v272_v9 }
  0x55   : > { %402 = vmatmul.mubr.f32.gmra.mrb[12].mxu0 %v255_v10  ;;  %442 = vmatmul.mubr.f32.gmra.mrb[12].mxu1 %v271_v11 }
  0x56   : > { %406 = vmatprep.mubr.f32.mxu0 %v258_v12  ;;  %446 = vmatprep.mubr.f32.mxu1 %v274_v13 }
  0x59   : > { %407 = vmatmul.mubr.f32.gmra.mrb[14].mxu0 %v257_v14  ;;  %447 = vmatmul.mubr.f32.gmra.mrb[14].mxu1 %v273_v15 }
 0x110   : > { %v684_v16 = vpop.f32.mrb[0].mxu0  ;;  %v708_v17 = vpop.f32.mrb[0].mxu1 }
 0x111   : > { %v685_v18 = vpop.f32.mrb[1].mxu0  ;;  %v709_v19 = vpop.f32.mrb[1].mxu1 }
 0x112   : > { %v686_v20 = vadd.f32 %v685_v18, %v684_v16  ;;  %v710_v21 = vadd.f32 %v709_v19, %v708_v17 }
 0x114   : > { %v687_v22 = vpop.f32.mrb[2].mxu0  ;;  %452 = vxpose.xlu0.b32.start [1/16] (narrow) %v686_v20, 64  ;;  %v711_v23 = vpop.f32.mrb[2].mxu1 }
 0x115   : > { %v688_v24 = vpop.f32.mrb[3].mxu0  ;;  %v712_v25 = vpop.f32.mrb[3].mxu1 }
 0x116   : > { %v689_v26 = vadd.f32 %v688_v24, %v687_v22  ;;  %v713_v27 = vadd.f32 %v712_v25, %v711_v23 }
 0x118   : > { %v690_v28 = vpop.f32.mrb[4].mxu0  ;;  %453 = vxpose.xlu0.b32.cont [2/16] (narrow) %v689_v26, 64  ;;  %v714_v29 = vpop.f32.mrb[4].mxu1 }
 0x119   : > { %v691_v30 = vpop.f32.mrb[5].mxu0  ;;  %v715_v31 = vpop.f32.mrb[5].mxu1 }
 0x11a   : > { %v692_v32 = vadd.f32 %v691_v30, %v690_v28  ;;  %v716_v33 = vadd.f32 %v715_v31, %v714_v29 }
 0x11c   : > { %v693_v34 = vpop.f32.mrb[6].mxu0  ;;  %454 = vxpose.xlu0.b32.cont [3/16] (narrow) %v692_v32, 64  ;;  %v717_v35 = vpop.f32.mrb[6].mxu1 }
 0x11d   : > { %v694_v36 = vpop.f32.mrb[7].mxu0  ;;  %v718_v37 = vpop.f32.mrb[7].mxu1 }
 0x11e   : > { %v695_v38 = vadd.f32 %v694_v36, %v693_v34  ;;  %v719_v39 = vadd.f32 %v718_v37, %v717_v35 }
 0x120   : > { %v696_v40 = vpop.f32.mrb[8].mxu0  ;;  %455 = vxpose.xlu0.b32.cont [4/16] (narrow) %v695_v38, 64  ;;  %v720_v41 = vpop.f32.mrb[8].mxu1 }
 0x121   : > { %v697_v42 = vpop.f32.mrb[9].mxu0  ;;  %v721_v43 = vpop.f32.mrb[9].mxu1 }
 0x122   : > { %v698_v44 = vadd.f32 %v697_v42, %v696_v40  ;;  %v722_v45 = vadd.f32 %v721_v43, %v720_v41 }
 0x124   : > { %v699_v46 = vpop.f32.mrb[10].mxu0  ;;  %456 = vxpose.xlu0.b32.cont [5/16] (narrow) %v698_v44, 64  ;;  %v723_v47 = vpop.f32.mrb[10].mxu1 }
 0x125   : > { %v700_v48 = vpop.f32.mrb[11].mxu0  ;;  %v724_v49 = vpop.f32.mrb[11].mxu1 }
 0x126   : > { %v701_v50 = vadd.f32 %v700_v48, %v699_v46  ;;  %v725_v51 = vadd.f32 %v724_v49, %v723_v47 }
 0x128   : > { %v702_v52 = vpop.f32.mrb[12].mxu0  ;;  %457 = vxpose.xlu0.b32.cont [6/16] (narrow) %v701_v50, 64  ;;  %v726_v53 = vpop.f32.mrb[12].mxu1 }
 0x129   : > { %v703_v54 = vpop.f32.mrb[13].mxu0  ;;  %v727_v55 = vpop.f32.mrb[13].mxu1 }
 0x12a   : > { %v704_v56 = vadd.f32 %v703_v54, %v702_v52  ;;  %v728_v57 = vadd.f32 %v727_v55, %v726_v53 }
 0x12c   : > { %v705_v58 = vpop.f32.mrb[14].mxu0  ;;  %458 = vxpose.xlu0.b32.cont [7/16] (narrow) %v704_v56, 64  ;;  %v729_v59 = vpop.f32.mrb[14].mxu1 }
 0x12d   : > { %v706_v60 = vpop.f32.mrb[15].mxu0  ;;  %v730_v61 = vpop.f32.mrb[15].mxu1 }
 0x12e   : > { %v707_v62 = vadd.f32 %v706_v60, %v705_v58  ;;  %v731_v63 = vadd.f32 %v730_v61, %v729_v59 }
 0x130   : > { %459 = vxpose.xlu0.b32.cont [8/16] (narrow) %v707_v62, 64 }
 0x134   : > { %460 = vxpose.xlu0.b32.cont [9/16] (narrow) %v710_v21, 64 }
 0x138   : > { %461 = vxpose.xlu0.b32.cont [10/16] (narrow) %v713_v27, 64 }
 0x13c   : > { %462 = vxpose.xlu0.b32.cont [11/16] (narrow) %v716_v33, 64 }
 0x140   : > { %463 = vxpose.xlu0.b32.cont [12/16] (narrow) %v719_v39, 64 }
 0x144   : > { %464 = vxpose.xlu0.b32.cont [13/16] (narrow) %v722_v45, 64 }
 0x148   : > { %465 = vxpose.xlu0.b32.cont [14/16] (narrow) %v725_v51, 64 }
 0x14c   : > { %466 = vxpose.xlu0.b32.cont [15/16] (narrow) %v728_v57, 64 }
 0x150   : > { %467 = vxpose.xlu0.b32.end [16/16] (narrow) %v731_v63, 64 }
 0x194   : > { %v468_v1 = vpop.trf.xlu0 }
 0x195   : > { %v491_v2 = vadd.f32 %v644_v0, %v468_v1 }
 0x197   : > { %499 = vst [vmem:[%s223_s4] sm:$0xff] %v491_v2 }
 0x198   : > { %v469_v3 = vpop.trf.xlu0 }
 0x199   : > { %v492_v4 = vadd.f32 %v644_v0, %v469_v3 }
 0x19b   : > { %500 = vst [vmem:[%s223_s4 + $0x8] sm:$0xff] %v492_v4 }
 0x19c   : > { %v470_v5 = vpop.trf.xlu0 }
 0x19d   : > { %v493_v6 = vadd.f32 %v644_v0, %v470_v5 }
 0x19f   : > { %501 = vst [vmem:[%s223_s4 + $0x10] sm:$0xff] %v493_v6 }
 0x1a0   : > { %v471_v7 = vpop.trf.xlu0 }
 0x1a1   : > { %v494_v8 = vadd.f32 %v644_v0, %v471_v7 }
 0x1a3   : > { %502 = vst [vmem:[%s223_s4 + $0x18] sm:$0xff] %v494_v8 }
 0x1a4   : > { %v472_v9 = vpop.trf.xlu0 }
 0x1a5   : > { %v495_v10 = vadd.f32 %v644_v0, %v472_v9 }
 0x1a7   : > { %503 = vst [vmem:[%s223_s4 + $0x20] sm:$0xff] %v495_v10 }
 0x1a8   : > { %v473_v11 = vpop.trf.xlu0 }
 0x1a9   : > { %v496_v12 = vadd.f32 %v644_v0, %v473_v11 }
 0x1ab   : > { %504 = vst [vmem:[%s223_s4 + $0x28] sm:$0xff] %v496_v12 }
 0x1ac   : > { %v474_v13 = vpop.trf.xlu0 }
 0x1ad   : > { %v497_v14 = vadd.f32 %v644_v0, %v474_v13 }
 0x1af   : > { %505 = vst [vmem:[%s223_s4 + $0x30] sm:$0xff] %v497_v14 }
 0x1b0   : > { %v475_v15 = vpop.trf.xlu0 }
 0x1b1   : > { %v498_v16 = vadd.f32 %v644_v0, %v475_v15 }
 0x1b3   : > { %506 = vst [vmem:[%s223_s4 + $0x38] sm:$0xff] %v498_v16 }
 0x1b4   : > { %850 = shalt.err (!%p847_p5)
}
 0x1b5   : > { %s851_s21 = scalar_lea.hbm %s1140_s9, 1024  ;;  %s855_s27 = scalar_lea.hbm %s1195_s3, 2048 }
 0x1b6   : > { %p852_p6 = scmp.ne.s32.totalorder %s1140_s9, %s851_s21  ;;  %p856_p10 = scmp.lt.u32.totalorder %s1140_s9, %s1195_s3 }
 0x1b7   : > { %p857_p11 = scmp.lt.u32.totalorder %s855_s27, %s851_s21  ;;  %p859_p13 = scmp.lt.u32.totalorder %s851_s21, %s1140_s9 }
 0x1b8   : > { %p853_p7 = pnand %p852_p6, %p980_p4 }
 0x1b9   : > { %p858_p12 = por %p857_p11, %p856_p10 }
 0x1ba   : > { %p854_p9 = pneg %p853_p7 }
 0x1bb   : > { %p860_p0 = por %p859_p13, %p858_p12 }
 0x1bd   : > { %p861_p1 = pnand %p860_p0, %p854_p9 }
 0x1bf   : > { %864 = shalt.err (!%p861_p1)
}
 0x1c0   : > { %s918_s30 = smov 128   ;;  %s919_s4 = smov 8  }
 0x1c1   : > { %780 = dma.vmem_to_hbm [thread:$0]  (%p980_p4), %s1142_s6, 1024, %s1140_s9, %s1146_s10, %s918_s30, %s918_s30, %s919_s4  }
 0x1c2 PF: > { %p786_p2 = scmp.ge.s32.totalorder %s915_s17, 2  ;;  %s539_s5 = sand.u32 1, %s895_s12  }
 0x1c3   : > { %s540_s7 = scalar_lea.sflag [#allocation3], %s539_s5 }
 0x1c4   : > { %p783_p3 = pnand %p786_p2, %p987_p8 }
 0x1c6   : > { %890 = dma.done.wait (!%p783_p3), %s540_s7, 1024  }
 0x1c7   : > { %892 = vsyncadd (!%p783_p3), %s540_s7, 4294966272  ;;  %s16_s17 = sadd.s32 1, %s915_s17   ;;  %s1198_s12 = smov %s899_s13 }
 0x1c8   : > { %p13_p5 = scmp.ge.s32.totalorder %s16_s17, 4   ;;  %s1199_s13 = smov %s903_s14 }
 0x1c9   : > { %s1200_s14 = smov %s993_s25  ;;  %s1201_s15 = smov %s911_s16 }
 0x1ca   : > { %s1202_s16 = smov %s1204_s20  ;;  %15 = sbr.rel (!%p13_p5) target bundleno = 4 (0x4), region = 73 }
 0x1d1   :  { %545 = vsyncpa [#allocation3], 1 }
 0x1d2   :  { %547 = vsyncpa [#allocation3 + $0x1], 1 }

</bundles_post_ra>
